<compile_context>
chip_gen: v5e
topology: v5e:2x2
jax: 0.10.0
libtpu: 0.0.40
codegen_flags: <defaults>
</compile_context>

<pallas_src>
import functools

import jax
import jax.numpy as jnp
from jax.experimental import pallas as pl
from jax.experimental.pallas import tpu as pltpu


def _round_up(x, m):
    return ((x + m - 1) // m) * m


def _pick_b_tile(B):
    """Batch tile selection.

    B <= 128: one sublane-aligned full-extent tile.
    B  > 128: a multiple of 128 (lane-dense transposed output), up to 512,
              preferring >= 2 grid steps so v7x can megacore-shard the grid.
    """
    if B <= 128:
        return _round_up(max(B, 1), 8)
    n128 = pl.cdiv(B, 128)
    return 128 * max(1, min(4, n128 // 2))


def cbow_kernel(ctx_ref, cand_ref, logits_ref, *, inv_cw):
    """One batch tile.

    ctx_ref:    (B_TILE, Cw, E)   context embeddings (storage dtype)
    cand_ref:   (1+K, B_TILE, E)  candidates, row 0 = target, rows 1..K = negatives
    logits_ref: (1+K, B_TILE)     scores, batch on the lane axis (lane-dense store)
    """
    # Upcast to f32 for the math (correct on v5e; trivial cost on v6e/v7x).
    ctx_sum = jnp.sum(ctx_ref[...].astype(jnp.float32), axis=1)       # (B_TILE, E)
    cand = cand_ref[...].astype(jnp.float32)                          # (1+K, B_TILE, E)
    # score[c, b] = (1/Cw) * sum_e cand[c, b, e] * ctx_sum[b, e]
    scores = jnp.sum(cand * ctx_sum[None, :, :], axis=-1)             # (1+K, B_TILE)
    logits_ref[...] = scores * inv_cw


def cbow_forward(W, C, context, target, neg_samples, storage_dtype=jnp.float32):
    """Pallas-backed CBOW forward.

    W, C: (vocab, E) embedding tables (row 0 is the zeroed padding_idx=0 row).
    Returns (logits, labels), each (B, 1+K), matching the PyTorch module.
    """
    B, Cw = context.shape
    K = neg_samples.shape[1]
    Kp1 = 1 + K
    E = W.shape[1]

    # Lane-full embedding width (zero columns don't change the dot products).
    # NOTE: in a real model the tables are padded once at init, not per call.
    E_pad = _round_up(E, 128)
    if E_pad != E:
        W = jnp.pad(W, ((0, 0), (0, E_pad - E)))
        C = jnp.pad(C, ((0, 0), (0, E_pad - E)))
    W = W.astype(storage_dtype)
    C = C.astype(storage_dtype)

    # Batch tiling: pad the *index arrays* with 0 (the zeroed padding row) so
    # the gathers produce already-padded embeddings -- no f32 tensor pads.
    B_TILE = _pick_b_tile(B)
    Bp = _round_up(B, B_TILE)
    if Bp != B:
        pad = Bp - B
        context = jnp.pad(context, ((0, pad), (0, 0)))
        target = jnp.pad(target, ((0, pad),))
        neg_samples = jnp.pad(neg_samples, ((0, pad), (0, 0)))

    # Gather directly into the layouts the kernel consumes.
    ctx_embed = W[context]                                              # (Bp, Cw, E_pad)
    cand_idx = jnp.concatenate([target[None, :], neg_samples.T], axis=0)  # (Kp1, Bp)
    cand_t = C[cand_idx]                                                # (Kp1, Bp, E_pad)

    grid = (Bp // B_TILE,)

    # Explicit scoped-VMEM limit: double-buffered inputs + output, with slack.
    itemsize = jnp.dtype(storage_dtype).itemsize
    tile_bytes = ((B_TILE * Cw * E_pad + Kp1 * B_TILE * E_pad) * itemsize
                  + Kp1 * B_TILE * 4)
    vmem_limit = int(min(max(4 * tile_bytes, 32 << 20), 48 << 20))

    logits_t = pl.pallas_call(
        functools.partial(cbow_kernel, inv_cw=1.0 / Cw),
        out_shape=jax.ShapeDtypeStruct((Kp1, Bp), jnp.float32),
        grid=grid,
        in_specs=[
            pl.BlockSpec((B_TILE, Cw, E_pad), lambda i: (i, 0, 0)),
            pl.BlockSpec((Kp1, B_TILE, E_pad), lambda i: (0, i, 0)),
        ],
        out_specs=pl.BlockSpec((Kp1, B_TILE), lambda i: (0, i)),
        compiler_params=pltpu.CompilerParams(
            dimension_semantics=("parallel",),
            vmem_limit_bytes=vmem_limit,
        ),
    )(ctx_embed, cand_t)

    logits = logits_t[:, :B].T                                          # (B, 1+K)

    # Labels are a constant pattern -> built outside the kernel (no DMA).
    labels = jnp.zeros((B, Kp1), dtype=jnp.float32).at[:, 0].set(1.0)
    return logits, labels


def cbow_reference(W, C, context, target, neg_samples):
    """Pure-JAX reference mirroring the PyTorch forward."""
    ctx_embed = W[context].mean(axis=1)                    # (B, E)
    tgt_embed = C[target]                                  # (B, E)
    neg_embed = C[neg_samples]                             # (B, K, E)
    pos = jnp.sum(ctx_embed * tgt_embed, axis=1)           # (B,)
    neg = jnp.einsum('bke,be->bk', neg_embed, ctx_embed)   # (B, K)
    logits = jnp.concatenate([pos[:, None], neg], axis=1)
    labels = jnp.concatenate(
        [jnp.ones_like(pos[:, None]), jnp.zeros_like(neg)], axis=1)
    return logits, labels


if __name__ == "__main__":
    vocab_size = 100
    embed_size = 32
    B, Cw, K = 8, 4, 5

    key = jax.random.PRNGKey(0)
    kW, kC, kctx, ktgt, kneg = jax.random.split(key, 5)

    # nn.Embedding default init: N(0,1); padding_idx=0 row zeroed.
    W = jax.random.normal(kW, (vocab_size, embed_size), dtype=jnp.float32)
    C = jax.random.normal(kC, (vocab_size, embed_size), dtype=jnp.float32)
    W = W.at[0].set(0.0)
    C = C.at[0].set(0.0)

    context = jax.random.randint(kctx, (B, Cw), 1, vocab_size, dtype=jnp.int32)
    target = jax.random.randint(ktgt, (B,), 1, vocab_size, dtype=jnp.int32)
    neg_samples = jax.random.randint(kneg, (B, K), 1, vocab_size, dtype=jnp.int32)

    ref_logits, ref_labels = cbow_reference(W, C, context, target, neg_samples)

    # f32 storage (exact path, matches the PyTorch module numerics).
    fwd_f32 = jax.jit(cbow_forward)
    logits, labels = jax.block_until_ready(
        fwd_f32(W, C, context, target, neg_samples))
    assert logits.shape == (B, 1 + K) and labels.shape == (B, 1 + K)
    assert jnp.allclose(logits, ref_logits, atol=1e-4, rtol=1e-4)
    assert jnp.allclose(labels, ref_labels)

    # bf16 storage of the gathered embeddings (memory-bound HBM saving on
    # v5e/v6e/v7x); compute upcast to f32 in-kernel, looser tolerance.
    fwd_bf16 = jax.jit(
        functools.partial(cbow_forward, storage_dtype=jnp.bfloat16))
    logits_bf16, labels_bf16 = jax.block_until_ready(
        fwd_bf16(W, C, context, target, neg_samples))
    assert logits_bf16.shape == (B, 1 + K)
    assert jnp.allclose(logits_bf16, ref_logits, atol=0.25, rtol=0.05)
    assert jnp.allclose(labels_bf16, ref_labels)

    print("KERNEL_OK")
</pallas_src>

<mosaic_0001>
module attributes {stable_mosaic.version = 11 : i64} {
  func.func @cbow_kernel(%arg0: i32, %arg1: memref<8x4x128xf32, #tpu.memory_space<vmem>>, %arg2: memref<6x8x128xf32, #tpu.memory_space<vmem>>, %arg3: memref<6x8xf32, #tpu.memory_space<vmem>>) attributes {dimension_semantics = [#tpu.dimension_semantics<parallel>], iteration_bounds = array<i64: 1>, scalar_prefetch = 0 : i64, scratch_operands = 0 : i64, tpu.core_type = #tpu.core_type<tc>, window_params = [{transform_indices = @transform_0, window_bounds = array<i64: 8, 4, 128>}, {transform_indices = @transform_1, window_bounds = array<i64: 6, 8, 128>}, {transform_indices = @transform_2, window_bounds = array<i64: 6, 8>}]} {
    %c0 = arith.constant 0 : index
    %c0_0 = arith.constant 0 : index
    %c0_1 = arith.constant 0 : index
    %0 = vector.load %arg1[%c0, %c0_0, %c0_1] : memref<8x4x128xf32, #tpu.memory_space<vmem>>, vector<8x4x128xf32>
    %cst = arith.constant dense<0.000000e+00> : vector<8x128xf32>
    %1 = vector.multi_reduction <add>, %0, %cst [1] : vector<8x4x128xf32> to vector<8x128xf32>
    %c0_2 = arith.constant 0 : index
    %c0_3 = arith.constant 0 : index
    %c0_4 = arith.constant 0 : index
    %2 = vector.load %arg2[%c0_2, %c0_3, %c0_4] : memref<6x8x128xf32, #tpu.memory_space<vmem>>, vector<6x8x128xf32>
    %3 = vector.shape_cast %1 : vector<8x128xf32> to vector<1x8x128xf32>
    %4 = vector.broadcast %3 : vector<1x8x128xf32> to vector<6x8x128xf32>
    %5 = arith.mulf %2, %4 : vector<6x8x128xf32>
    %cst_5 = arith.constant dense<0.000000e+00> : vector<6x8xf32>
    %6 = vector.multi_reduction <add>, %5, %cst_5 [2] : vector<6x8x128xf32> to vector<6x8xf32>
    %cst_6 = arith.constant 2.500000e-01 : f32
    %7 = vector.broadcast %cst_6 : f32 to vector<6x8xf32>
    %8 = arith.mulf %6, %7 : vector<6x8xf32>
    %c0_7 = arith.constant 0 : index
    %c0_8 = arith.constant 0 : index
    %9 = vector.load %arg3[%c0_7, %c0_8] : memref<6x8xf32, #tpu.memory_space<vmem>>, vector<6x8xf32>
    tpu.vector_store %arg3[%c0_7, %c0_8], %8 {strides = array<i32>} : memref<6x8xf32, #tpu.memory_space<vmem>>, vector<6x8xf32>,
    return
  }
  func.func @transform_0(%arg0: i32) -> (i32, i32, i32) {
    %c0_i32 = arith.constant 0 : i32
    %c0_i32_0 = arith.constant 0 : i32
    %c0_i32_1 = arith.constant 0 : i32
    return %arg0, %c0_i32, %c0_i32_0 : i32, i32, i32
  }
  func.func @transform_1(%arg0: i32) -> (i32, i32, i32) {
    %c0_i32 = arith.constant 0 : i32
    %c0_i32_0 = arith.constant 0 : i32
    %c0_i32_1 = arith.constant 0 : i32
    return %c0_i32, %arg0, %c0_i32_0 : i32, i32, i32
  }
  func.func @transform_2(%arg0: i32) -> (i32, i32) {
    %c0_i32 = arith.constant 0 : i32
    %c0_i32_0 = arith.constant 0 : i32
    return %c0_i32, %arg0 : i32, i32
  }
}

</mosaic_0001>

<bundles_post_ra>
// kernel: cbow_forward.1
= control target key start
LH: loop header
LB: loop body
LE: loop exit
PB: predicated region body
PF: predicated region fallthrough
CT: control target
= control target key end

     0   :  { %vm19_vm0 = vcmask 1043456   ;;  %vm90_vm1 = vcmask 1041409   ;;  %vm92_vm2 = vcmask 1042434   ;;  %vm94_vm3 = vcmask 1043459   ;;  %s233_s0 = inlined_call_operand.vmem [shape: f32[8,4,128], index: 0, kind: input, shape index: {}]   ;;  %s234_s1 = inlined_call_operand.vmem [shape: f32[6,8,128], index: 1, kind: input, shape index: {}]   ;;  %s235_s2 = inlined_call_operand.vmem [shape: f32[6,8], index: 2, kind: output, shape index: {}]  }
   0x1   :  { %v11_v0 = vld [vmem:[%s233_s0] sm:$0xf]  ;;  %v12_v1 = vld [vmem:[%s233_s0 + $0x4] sm:$0xf]  ;;  %v13_v2 = vld [vmem:[%s233_s0 + $0x8] sm:$0xf] }
   0x2   :  { %v14_v3 = vld [vmem:[%s233_s0 + $0xc] sm:$0xf]  ;;  %v15_v4 = vld [vmem:[%s233_s0 + $0x10] sm:$0xf]  ;;  %v16_v5 = vld [vmem:[%s233_s0 + $0x14] sm:$0xf] }
   0x3   :  { %v17_v6 = vld [vmem:[%s233_s0 + $0x18] sm:$0xf]  ;;  %v20_v7 = vsel %vm19_vm0, %v11_v0, 0.0  ;;  %v27_v8 = vsel %vm19_vm0, %v12_v1, 0.0  ;;  %v18_v9 = vld [vmem:[%s233_s0 + $0x1c] sm:$0xf] }
   0x4   :  { %v21_v10 = vrot.slane %v20_v7, 4  ;;  %v28_v11 = vrot.slane %v27_v8, 4  ;;  %v34_v12 = vsel %vm19_vm0, %v13_v2, 0.0  ;;  %v41_v13 = vsel %vm19_vm0, %v14_v3, 0.0 }
   0x5   :  { %v35_v14 = vrot.slane %v34_v12, 4  ;;  %v42_v15 = vrot.slane %v41_v13, 4  ;;  %v48_v16 = vsel %vm19_vm0, %v15_v4, 0.0  ;;  %v55_v17 = vsel %vm19_vm0, %v16_v5, 0.0  ;;  %v76_v4 = vld [vmem:[%s234_s1] sm:$0xff] }
   0x6   :  { %v22_v18 = vadd.f32 %v21_v10, %v20_v7  ;;  %v29_v19 = vadd.f32 %v28_v11, %v27_v8  ;;  %v49_v20 = vrot.slane %v48_v16, 4  ;;  %v56_v21 = vrot.slane %v55_v17, 4  ;;  %v80_v7 = vld [vmem:[%s234_s1 + $0x20] sm:$0xff] }
   0x7   :  { %v36_v22 = vadd.f32 %v35_v14, %v34_v12  ;;  %v43_v23 = vadd.f32 %v42_v15, %v41_v13  ;;  %v62_v24 = vsel %vm19_vm0, %v17_v6, 0.0  ;;  %v69_v25 = vsel %vm19_vm0, %v18_v9, 0.0  ;;  %v78_v6 = vld [vmem:[%s234_s1 + $0x10] sm:$0xff]  ;;  %v77_v13 = vld [vmem:[%s234_s1 + $0x8] sm:$0xff]  ;;  %v79_v14 = vld [vmem:[%s234_s1 + $0x18] sm:$0xff] }
   0x8   :  { %v23_v26 = vrot.slane %v22_v18, 2  ;;  %v30_v27 = vrot.slane %v29_v19, 2  ;;  %v50_v28 = vadd.f32 %v49_v20, %v48_v16  ;;  %v57_v29 = vadd.f32 %v56_v21, %v55_v17  ;;  %v81_v15 = vld [vmem:[%s234_s1 + $0x28] sm:$0xff] }
   0x9   :  { %v37_v30 = vrot.slane %v36_v22, 2  ;;  %v44_v31 = vrot.slane %v43_v23, 2  ;;  %v63_v32 = vrot.slane %v62_v24, 4  ;;  %v70_v33 = vrot.slane %v69_v25, 4 }
   0xa   :  { %v24_v34 = vadd.f32 %v23_v26, %v22_v18  ;;  %v31_v35 = vadd.f32 %v30_v27, %v29_v19  ;;  %v51_v36 = vrot.slane %v50_v28, 2  ;;  %v58_v37 = vrot.slane %v57_v29, 2 }
   0xb   :  { %v38_v38 = vadd.f32 %v37_v30, %v36_v22  ;;  %v45_v39 = vadd.f32 %v44_v31, %v43_v23  ;;  %v64_v40 = vadd.f32 %v63_v32, %v62_v24  ;;  %v71_v41 = vadd.f32 %v70_v33, %v69_v25 }
   0xc   :  { %v25_v42 = vrot.slane %v24_v34, 1  ;;  %v32_v43 = vrot.slane %v31_v35, 1  ;;  %v52_v44 = vadd.f32 %v51_v36, %v50_v28  ;;  %v59_v45 = vadd.f32 %v58_v37, %v57_v29 }
   0xd   :  { %v39_v46 = vrot.slane %v38_v38, 1  ;;  %v46_v47 = vrot.slane %v45_v39, 1  ;;  %v65_v48 = vrot.slane %v64_v40, 2  ;;  %v72_v49 = vrot.slane %v71_v41, 2 }
   0xe   :  { %v26_v50 = vadd.f32 %v25_v42, %v24_v34  ;;  %v33_v51 = vadd.f32 %v32_v43, %v31_v35  ;;  %v53_v52 = vrot.slane %v52_v44, 1  ;;  %v60_v53 = vrot.slane %v59_v45, 1 }
   0xf   :  { %v40_v54 = vadd.f32 %v39_v46, %v38_v38  ;;  %v47_v55 = vadd.f32 %v46_v47, %v45_v39  ;;  %v66_v56 = vadd.f32 %v65_v48, %v64_v40  ;;  %v73_v57 = vadd.f32 %v72_v49, %v71_v41 }
  0x10   :  { %v54_v58 = vadd.f32 %v53_v52, %v52_v44  ;;  %v61_v59 = vadd.f32 %v60_v53, %v59_v45  ;;  %v91_v60 = vsel %vm90_vm1, %v33_v51, %v26_v50  ;;  %vm96_vm4 = vcmask 1044484  }
  0x11   :  { %v67_v61 = vrot.slane %v66_v56, 1  ;;  %v74_v62 = vrot.slane %v73_v57, 1  ;;  %v93_v63 = vsel %vm92_vm2, %v40_v54, %v91_v60  ;;  %vm98_vm5 = vcmask 1045509  }
  0x12   :  { %v95_v0 = vsel %vm94_vm3, %v47_v55, %v93_v63  ;;  %vm100_vm6 = vcmask 1046534   ;;  %vm102_vm7 = vcmask 1047559   ;;  %v135_v22 = vlaneseq }
  0x13   :  { %v68_v1 = vadd.f32 %v67_v61, %v66_v56  ;;  %v75_v2 = vadd.f32 %v74_v62, %v73_v57  ;;  %v97_v3 = vsel %vm96_vm4, %v54_v58, %v95_v0  ;;  %vm149_vm8 = vcmask 62464  }
  0x14   :  { %v99_v5 = vsel %vm98_vm5, %v61_v59, %v97_v3  ;;  %v136_v23 = vand.u32 127, %v135_v22 }
  0x15   :  { %v101_v8 = vsel %vm100_vm6, %v68_v1, %v99_v5 }
  0x16   :  { %v103_v9 = vsel %vm102_vm7, %v75_v2, %v101_v8 }
  0x17   :  { %v105_v10 = vmul.f32 %v103_v9, %v76_v4  ;;  %v107_v11 = vmul.f32 %v103_v9, %v78_v6  ;;  %v109_v12 = vmul.f32 %v103_v9, %v80_v7  ;;  %v106_v16 = vmul.f32 %v103_v9, %v77_v13 }
  0x18   :  { %v108_v17 = vmul.f32 %v103_v9, %v79_v14  ;;  %v110_v18 = vmul.f32 %v103_v9, %v81_v15 }
  0x19   :  { %111 = vadd.xlane.f32.xlu0 %v105_v10  ;;  %115 = vadd.xlane.f32.xlu1 %v107_v11 }
  0x1a   :  { %119 = vadd.xlane.f32.xlu2 %v109_v12 }
  0x21   :  { %113 = vadd.xlane.f32.xlu0 %v106_v16  ;;  %117 = vadd.xlane.f32.xlu1 %v108_v17 }
  0x22   :  { %121 = vadd.xlane.f32.xlu2 %v110_v18 }
  0x8c   :  { %v112_v19 = vpop.xlane.xlu0 %111  ;;  %v116_v20 = vpop.xlane.xlu1 %115 }
  0x8d   :  { %v120_v21 = vpop.xlane.xlu2 %119  ;;  %v123_v24 = vmul.f32 0.25, %v112_v19  ;;  %v125_v25 = vmul.f32 0.25, %v116_v20 }
  0x8e   :  { %v127_v31 = vmul.f32 0.25, %v120_v21 }
  0x8f   :  { %v137_v33 = vperm.slane %v123_v24, %v136_v23  ;;  %v139_v36 = vperm.slane %v125_v25, %v136_v23 }
  0x90   :  { %v141_v39 = vperm.slane %v127_v31, %v136_v23 }
  0x94   :  { %v114_v26 = vpop.xlane.xlu0 %113  ;;  %v118_v27 = vpop.xlane.xlu1 %117 }
  0x95   :  { %v124_v28 = vmul.f32 0.25, %v114_v26  ;;  %v126_v29 = vmul.f32 0.25, %v118_v27  ;;  %v122_v30 = vpop.xlane.xlu2 %121 }
  0x96   :  { %v128_v32 = vmul.f32 0.25, %v122_v30 }
  0x97   :  { %v138_v34 = vperm.slane %v124_v28, %v136_v23  ;;  %v140_v35 = vperm.slane %v126_v29, %v136_v23 }
  0x98   :  { %v142_v38 = vperm.slane %v128_v32, %v136_v23 }
  0x99   :  { %v143_v37 = vsel %vm90_vm1, %v138_v34, %v137_v33 }
  0x9a   :  { %v144_v40 = vsel %vm92_vm2, %v139_v36, %v143_v37 }
  0x9b   :  { %v145_v41 = vsel %vm94_vm3, %v140_v35, %v144_v40 }
  0x9c   :  { %v146_v42 = vsel %vm96_vm4, %v141_v39, %v145_v41 }
  0x9d   :  { %v147_v43 = vsel %vm98_vm5, %v142_v38, %v146_v42 }
  0x9e   :  { %150 = vst.msk [vmem:[%s235_s2] sm:$0x3f] %vm149_vm8, %v147_v43 }

</bundles_post_ra>
